<compile_context>
chip_gen: v7x
topology: tpu7x:2x2x1
jax: 0.10.0
libtpu: 0.0.40
codegen_flags: <defaults>
</compile_context>

<pallas_src>
import functools

import jax
import jax.numpy as jnp
from jax.experimental import pallas as pl
from jax.experimental.pallas import tpu as pltpu

SUBLANE = 8


def _round_up(x, m):
    return (x + m - 1) // m * m


def _pick_batch_tile(B, tb_max=1024):
    """Adaptive batch tile: big enough to amortize per-grid-step overhead,
    small enough that the grid is >= 2 steps and even (balanced across v7x's
    two TensorCores), with minimal batch-padding waste."""
    if B <= SUBLANE:
        return SUBLANE
    n_tiles = max(2, pl.cdiv(B, tb_max))    # >= 2 tiles: both v7x TCs get work
    if n_tiles % 2:
        n_tiles += 1                        # even grid: balanced across 2 TCs
    return min(tb_max, _round_up(pl.cdiv(B, n_tiles), SUBLANE))


# ---------------------------------------------------------------------------
# Pallas kernel: fused MLP trunk of DeepCFRModel (one batch tile per grid step)
# ---------------------------------------------------------------------------
def deepcfr_kernel(feat_ref,
                   l1w, l1b, l2w, l2b, l3w, l3b,          # fused card/bet trunk
                   m1w, m1b, m2w, m2b, m3w, m3b,          # combined trunk
                   ahw, ahb,                               # action head (unpadded)
                   out_ref, *, dim):
    def mm(x, w_ref):
        # bf16 x bf16 MXU matmul with f32 accumulation.
        return jnp.dot(x.astype(w_ref.dtype), w_ref[...],
                       preferred_element_type=jnp.float32)

    relu = lambda v: jnp.maximum(v, 0.0)

    # L1: [x | y] = relu([cards | bets] @ blockdiag(card1, bet1) + [c1b | b1b])
    h = relu(mm(feat_ref[...], l1w) + l1b[...])

    # L2: x = relu(card2(x));  y = relu(bet2(y) + y)
    #     block-diagonal matmul + lane-masked residual add on the y half only.
    col = jax.lax.broadcasted_iota(jnp.int32, h.shape, 1)
    h = relu(mm(h, l2w) + l2b[...] + jnp.where(col >= dim, h, 0.0))

    # L3: x = relu(card3(x));  y rides through the identity block unchanged
    #     (ReLU is idempotent on y >= 0 and the identity-block bias is zero).
    h = relu(mm(h, l3w) + l3b[...])

    # comb1 acts on the already-concatenated [x | y]: one (2*dim, dim) matmul.
    z = relu(mm(h, m1w) + m1b[...])
    z = relu(mm(z, m2w) + m2b[...] + z)      # comb2 + residual (f32)
    z = relu(mm(z, m3w) + m3b[...] + z)      # comb3 + residual (f32)

    # F.normalize(z) (eps=1e-12): rsqrt keeps the transcendental on the EUP.
    ss = jnp.sum(z * z, axis=1, keepdims=True)
    z = z * jax.lax.rsqrt(jnp.maximum(ss, 1e-24))

    # Unpadded (TB, nactions) store: tiny masked vst, ~32x less HBM writeback
    # than a 128-lane-padded f32 store.
    out_ref[...] = mm(z, ahw) + ahb[...]


PARAM_ORDER = (
    "l1w", "l1b", "l2w", "l2b", "l3w", "l3b",
    "m1w", "m1b", "m2w", "m2b", "m3w", "m3b",
    "ahw", "ahb",
)


@jax.jit
def deepcfr_mlp(feats, kparams):
    """feats: [B, Fin] bf16 with Fin = dim*ncardtypes + 2*nbets.
    kparams: fused kernel params ([in, out] bf16 weights, f32 biases)."""
    B, Fin = feats.shape
    dim = kparams["m2w"].shape[0]
    nactions = kparams["ahw"].shape[1]
    assert kparams["l1w"].shape[0] == Fin

    TB = _pick_batch_tile(B)
    Bp = _round_up(B, TB)
    if Bp != B:
        feats = jnp.pad(feats, ((0, Bp - B), (0, 0)))

    weights = [kparams[k] for k in PARAM_ORDER]

    in_specs = (
        [pl.BlockSpec((TB, Fin), lambda i: (i, 0))]                    # streamed
        + [pl.BlockSpec(w.shape, lambda i: (0, 0)) for w in weights]   # resident
    )
    out_spec = pl.BlockSpec((TB, nactions), lambda i: (i, 0))

    mm_keys = ("l1w", "l2w", "l3w", "m1w", "m2w", "m3w", "ahw")
    flops = 2 * Bp * sum(kparams[k].shape[0] * kparams[k].shape[1] for k in mm_keys)
    bytes_accessed = (
        Bp * Fin * 2 + Bp * nactions * 4
        + sum(int(w.size) * w.dtype.itemsize for w in weights)
    )

    out = pl.pallas_call(
        functools.partial(deepcfr_kernel, dim=dim),
        out_shape=jax.ShapeDtypeStruct((Bp, nactions), jnp.float32),
        grid=(Bp // TB,),
        in_specs=in_specs,
        out_specs=out_spec,
        compiler_params=pltpu.CompilerParams(
            dimension_semantics=("parallel",)),
        cost_estimate=pl.CostEstimate(
            flops=int(flops),
            transcendentals=int(Bp),
            bytes_accessed=int(bytes_accessed)),
    )(feats, *weights)

    return out[:B]


# ---------------------------------------------------------------------------
# Plain-JAX glue: CardEmbedding (gather + masked sum) and bet features
# ---------------------------------------------------------------------------
def card_embedding(tables, card_group):
    """tables = (rank[13,d], suit[4,d], card[52,d]); card_group: [B, ncards] int32."""
    rank_t, suit_t, card_t = tables
    B, n = card_group.shape
    x = card_group.reshape(-1)
    valid = (x >= 0).astype(jnp.float32)
    xc = jnp.clip(x, 0, None)
    embs = card_t[xc] + rank_t[xc // 4] + suit_t[xc % 4]
    embs = embs * valid[:, None]
    return embs.reshape(B, n, -1).sum(axis=1)


def deepcfr_forward(cards, bets, params, kparams):
    # TODO(synk): CardEmbedding gathers (rank/suit/card lookups + masked sum)
    # and bet-feature clamp/ge/concat stay in plain JAX; a DMA-gather Pallas
    # kernel is possible but not worthwhile for 13/4/52-row tables.
    card_embs = jnp.concatenate(
        [card_embedding(t, g) for t, g in zip(params["emb_tables"], cards)], axis=1
    )
    bet_size = jnp.clip(bets, 0.0, 1.0e6)
    bet_occurred = (bets >= 0).astype(jnp.float32)
    # Single lane-concatenated streamed input (no 128-lane padding of the
    # 2*nbets bet features -> no HBM read amplification).
    feats = jnp.concatenate([card_embs, bet_size, bet_occurred], axis=1)
    return deepcfr_mlp(feats.astype(jnp.bfloat16), kparams)


# ---------------------------------------------------------------------------
# Deterministic parameter init (shapes match the PyTorch __init__) + packing
# ---------------------------------------------------------------------------
def init_params(key, ncardtypes, nbets, nactions, dim):
    keys = iter(jax.random.split(key, 64))

    def w(shape, scale=0.05):
        return (scale * jax.random.normal(next(keys), shape)).astype(jnp.float32)

    emb_tables = tuple(
        (w((13, dim)), w((4, dim)), w((52, dim))) for _ in range(ncardtypes)
    )
    return {
        "emb_tables": emb_tables,
        "c1w": w((dim * ncardtypes, dim)), "c1b": w((1, dim)),
        "c2w": w((dim, dim)), "c2b": w((1, dim)),
        "c3w": w((dim, dim)), "c3b": w((1, dim)),
        "b1w": w((nbets * 2, dim)), "b1b": w((1, dim)),
        "b2w": w((dim, dim)), "b2b": w((1, dim)),
        "m1w": w((2 * dim, dim)), "m1b": w((1, dim)),
        "m2w": w((dim, dim)), "m2b": w((1, dim)),
        "m3w": w((dim, dim)), "m3b": w((1, dim)),
        "ahw": w((dim, nactions)), "ahb": w((1, nactions)),
    }


def prepare_kernel_params(params):
    """Pack per-layer params into the fused kernel layout: block-diagonal
    card/bet weights (bf16), concatenated biases (f32), comb1 as-is.
    NOTE (v5e): for dim > 64 prefer the unfused split-weight layout there
    (2*dim > 128 doubles MXU passes on the 128-wide v5e MXU)."""
    dim = params["c2w"].shape[0]

    def blockdiag(a, b):
        ka, na = a.shape
        kb, nb = b.shape
        out = jnp.zeros((ka + kb, na + nb), jnp.float32)
        out = out.at[:ka, :na].set(a)
        out = out.at[ka:, na:].set(b)
        return out

    eye = jnp.eye(dim, dtype=jnp.float32)
    zero_bias = jnp.zeros((1, dim), jnp.float32)
    kp = {
        "l1w": blockdiag(params["c1w"], params["b1w"]),
        "l1b": jnp.concatenate([params["c1b"], params["b1b"]], axis=1),
        "l2w": blockdiag(params["c2w"], params["b2w"]),
        "l2b": jnp.concatenate([params["c2b"], params["b2b"]], axis=1),
        "l3w": blockdiag(params["c3w"], eye),
        "l3b": jnp.concatenate([params["c3b"], zero_bias], axis=1),
        "m1w": params["m1w"], "m1b": params["m1b"],
        "m2w": params["m2w"], "m2b": params["m2b"],
        "m3w": params["m3w"], "m3b": params["m3b"],
        "ahw": params["ahw"], "ahb": params["ahb"],
    }
    return {k: (v.astype(jnp.float32) if k.endswith("b") else v.astype(jnp.bfloat16))
            for k, v in kp.items()}


# ---------------------------------------------------------------------------
# Pure-JAX reference using the ORIGINAL unfused layer structure (same
# bf16-operand / f32-accumulate recipe) — validates the weight packing.
# ---------------------------------------------------------------------------
def reference_forward(cards, bets, params):
    card_embs = jnp.concatenate(
        [card_embedding(t, g) for t, g in zip(params["emb_tables"], cards)], axis=1
    )
    bet_feats = jnp.concatenate(
        [jnp.clip(bets, 0.0, 1.0e6), (bets >= 0).astype(jnp.float32)], axis=1
    )
    mm = lambda a, w: jnp.dot(a.astype(jnp.bfloat16), w.astype(jnp.bfloat16),
                              preferred_element_type=jnp.float32)
    relu = lambda v: jnp.maximum(v, 0.0)
    p = params
    x = relu(mm(card_embs, p["c1w"]) + p["c1b"])
    x = relu(mm(x, p["c2w"]) + p["c2b"])
    x = relu(mm(x, p["c3w"]) + p["c3b"])
    y = relu(mm(bet_feats, p["b1w"]) + p["b1b"])
    y = relu(mm(y, p["b2w"]) + p["b2b"] + y)
    z = jnp.concatenate([x, y], axis=1)
    z = relu(mm(z, p["m1w"]) + p["m1b"])
    z = relu(mm(z, p["m2w"]) + p["m2b"] + z)
    z = relu(mm(z, p["m3w"]) + p["m3b"] + z)
    ss = jnp.sum(z * z, axis=1, keepdims=True)
    z = z * jax.lax.rsqrt(jnp.maximum(ss, 1e-24))
    return mm(z, p["ahw"]) + p["ahb"]


if __name__ == "__main__":
    B = 2
    dim = 32
    ncardtypes = 4
    nbets = 8
    nactions = 4
    cards_per_group = (2, 3, 1, 1)  # e.g. hole / flop / turn / river

    key = jax.random.PRNGKey(0)
    pkey, *ikeys = jax.random.split(key, 2 + ncardtypes)

    params = init_params(pkey, ncardtypes, nbets, nactions, dim)
    kparams = prepare_kernel_params(params)

    # card indices in [-1, 51]; -1 means "no card" (masked out)
    cards = [
        jax.random.randint(ikeys[i], (B, cards_per_group[i]), -1, 52, dtype=jnp.int32)
        for i in range(ncardtypes)
    ]
    bets = jax.random.uniform(ikeys[-1], (B, nbets), minval=-1.0, maxval=5.0)

    out = deepcfr_forward(cards, bets, params, kparams)
    out = jax.block_until_ready(out)
    assert out.shape == (B, nactions)

    ref = reference_forward(cards, bets, params)
    assert jnp.allclose(out, ref, atol=2e-3, rtol=2e-3), \
        float(jnp.max(jnp.abs(out - ref)))

    print("KERNEL_OK")
</pallas_src>

<mosaic_0001>
module attributes {stable_mosaic.version = 11 : i64} {
  func.func @deepcfr_kernel(%arg0: i32, %arg1: memref<8x144xbf16, #tpu.memory_space<vmem>>, %arg2: memref<144x64xbf16, #tpu.memory_space<vmem>>, %arg3: memref<1x64xf32, #tpu.memory_space<vmem>>, %arg4: memref<64x64xbf16, #tpu.memory_space<vmem>>, %arg5: memref<1x64xf32, #tpu.memory_space<vmem>>, %arg6: memref<64x64xbf16, #tpu.memory_space<vmem>>, %arg7: memref<1x64xf32, #tpu.memory_space<vmem>>, %arg8: memref<64x32xbf16, #tpu.memory_space<vmem>>, %arg9: memref<1x32xf32, #tpu.memory_space<vmem>>, %arg10: memref<32x32xbf16, #tpu.memory_space<vmem>>, %arg11: memref<1x32xf32, #tpu.memory_space<vmem>>, %arg12: memref<32x32xbf16, #tpu.memory_space<vmem>>, %arg13: memref<1x32xf32, #tpu.memory_space<vmem>>, %arg14: memref<32x4xbf16, #tpu.memory_space<vmem>>, %arg15: memref<1x4xf32, #tpu.memory_space<vmem>>, %arg16: memref<8x4xf32, #tpu.memory_space<vmem>>) attributes {dimension_semantics = [#tpu.dimension_semantics<parallel>], iteration_bounds = array<i64: 1>, scalar_prefetch = 0 : i64, scratch_operands = 0 : i64, tpu.core_type = #tpu.core_type<tc>, window_params = [{transform_indices = @transform_0, window_bounds = array<i64: 8, 144>}, {pipeline_mode = #tpu.pipeline_mode<synchronous>, transform_indices = @transform_1, window_bounds = array<i64: 144, 64>}, {pipeline_mode = #tpu.pipeline_mode<synchronous>, transform_indices = @transform_2, window_bounds = array<i64: 1, 64>}, {pipeline_mode = #tpu.pipeline_mode<synchronous>, transform_indices = @transform_3, window_bounds = array<i64: 64, 64>}, {pipeline_mode = #tpu.pipeline_mode<synchronous>, transform_indices = @transform_4, window_bounds = array<i64: 1, 64>}, {pipeline_mode = #tpu.pipeline_mode<synchronous>, transform_indices = @transform_5, window_bounds = array<i64: 64, 64>}, {pipeline_mode = #tpu.pipeline_mode<synchronous>, transform_indices = @transform_6, window_bounds = array<i64: 1, 64>}, {pipeline_mode = #tpu.pipeline_mode<synchronous>, transform_indices = @transform_7, window_bounds = array<i64: 64, 32>}, {pipeline_mode = #tpu.pipeline_mode<synchronous>, transform_indices = @transform_8, window_bounds = array<i64: 1, 32>}, {pipeline_mode = #tpu.pipeline_mode<synchronous>, transform_indices = @transform_9, window_bounds = array<i64: 32, 32>}, {pipeline_mode = #tpu.pipeline_mode<synchronous>, transform_indices = @transform_10, window_bounds = array<i64: 1, 32>}, {pipeline_mode = #tpu.pipeline_mode<synchronous>, transform_indices = @transform_11, window_bounds = array<i64: 32, 32>}, {pipeline_mode = #tpu.pipeline_mode<synchronous>, transform_indices = @transform_12, window_bounds = array<i64: 1, 32>}, {pipeline_mode = #tpu.pipeline_mode<synchronous>, transform_indices = @transform_13, window_bounds = array<i64: 32, 4>}, {pipeline_mode = #tpu.pipeline_mode<synchronous>, transform_indices = @transform_14, window_bounds = array<i64: 1, 4>}, {transform_indices = @transform_15, window_bounds = array<i64: 8, 4>}]} {
    %c0 = arith.constant 0 : index
    %c0_0 = arith.constant 0 : index
    %0 = vector.load %arg1[%c0, %c0_0] : memref<8x144xbf16, #tpu.memory_space<vmem>>, vector<8x144xbf16>
    %c0_1 = arith.constant 0 : index
    %c0_2 = arith.constant 0 : index
    %1 = vector.load %arg2[%c0_1, %c0_2] : memref<144x64xbf16, #tpu.memory_space<vmem>>, vector<144x64xbf16>
    %cst = arith.constant dense<0.000000e+00> : vector<8x64xf32>
    %2 = tpu.matmul %0, %1, %cst {dimension_numbers = #tpu.dot_dimension_numbers<[1], [0], [0], [1], [0, 0, 1, 1], [], []>} : vector<8x144xbf16>, vector<144x64xbf16>, vector<8x64xf32> -> vector<8x64xf32>
    %c0_3 = arith.constant 0 : index
    %c0_4 = arith.constant 0 : index
    %3 = vector.load %arg3[%c0_3, %c0_4] : memref<1x64xf32, #tpu.memory_space<vmem>>, vector<1x64xf32>
    %4 = vector.broadcast %3 : vector<1x64xf32> to vector<8x64xf32>
    %5 = arith.addf %2, %4 : vector<8x64xf32>
    %cst_5 = arith.constant 0.000000e+00 : f32
    %6 = vector.broadcast %cst_5 : f32 to vector<8x64xf32>
    %7 = arith.maximumf %5, %6 : vector<8x64xf32>
    %8 = tpu.iota {dimensions = array<i32: 1>} : vector<8x64xi32>
    %9 = arith.truncf %7 : vector<8x64xf32> to vector<8x64xbf16>
    %c0_6 = arith.constant 0 : index
    %c0_7 = arith.constant 0 : index
    %10 = vector.load %arg4[%c0_6, %c0_7] : memref<64x64xbf16, #tpu.memory_space<vmem>>, vector<64x64xbf16>
    %cst_8 = arith.constant dense<0.000000e+00> : vector<8x64xf32>
    %11 = tpu.matmul %9, %10, %cst_8 {dimension_numbers = #tpu.dot_dimension_numbers<[1], [0], [0], [1], [0, 0, 1, 1], [], []>} : vector<8x64xbf16>, vector<64x64xbf16>, vector<8x64xf32> -> vector<8x64xf32>
    %c0_9 = arith.constant 0 : index
    %c0_10 = arith.constant 0 : index
    %12 = vector.load %arg5[%c0_9, %c0_10] : memref<1x64xf32, #tpu.memory_space<vmem>>, vector<1x64xf32>
    %13 = vector.broadcast %12 : vector<1x64xf32> to vector<8x64xf32>
    %14 = arith.addf %11, %13 : vector<8x64xf32>
    %c32_i32 = arith.constant 32 : i32
    %15 = vector.broadcast %c32_i32 : i32 to vector<8x64xi32>
    %16 = arith.cmpi sge, %8, %15 : vector<8x64xi32>
    %cst_11 = arith.constant 0.000000e+00 : f32
    %17 = vector.broadcast %cst_11 : f32 to vector<8x64xf32>
    %18 = arith.select %16, %7, %17 : vector<8x64xi1>, vector<8x64xf32>
    %19 = arith.addf %14, %18 : vector<8x64xf32>
    %cst_12 = arith.constant 0.000000e+00 : f32
    %20 = vector.broadcast %cst_12 : f32 to vector<8x64xf32>
    %21 = arith.maximumf %19, %20 : vector<8x64xf32>
    %22 = arith.truncf %21 : vector<8x64xf32> to vector<8x64xbf16>
    %c0_13 = arith.constant 0 : index
    %c0_14 = arith.constant 0 : index
    %23 = vector.load %arg6[%c0_13, %c0_14] : memref<64x64xbf16, #tpu.memory_space<vmem>>, vector<64x64xbf16>
    %cst_15 = arith.constant dense<0.000000e+00> : vector<8x64xf32>
    %24 = tpu.matmul %22, %23, %cst_15 {dimension_numbers = #tpu.dot_dimension_numbers<[1], [0], [0], [1], [0, 0, 1, 1], [], []>} : vector<8x64xbf16>, vector<64x64xbf16>, vector<8x64xf32> -> vector<8x64xf32>
    %c0_16 = arith.constant 0 : index
    %c0_17 = arith.constant 0 : index
    %25 = vector.load %arg7[%c0_16, %c0_17] : memref<1x64xf32, #tpu.memory_space<vmem>>, vector<1x64xf32>
    %26 = vector.broadcast %25 : vector<1x64xf32> to vector<8x64xf32>
    %27 = arith.addf %24, %26 : vector<8x64xf32>
    %cst_18 = arith.constant 0.000000e+00 : f32
    %28 = vector.broadcast %cst_18 : f32 to vector<8x64xf32>
    %29 = arith.maximumf %27, %28 : vector<8x64xf32>
    %30 = arith.truncf %29 : vector<8x64xf32> to vector<8x64xbf16>
    %c0_19 = arith.constant 0 : index
    %c0_20 = arith.constant 0 : index
    %31 = vector.load %arg8[%c0_19, %c0_20] : memref<64x32xbf16, #tpu.memory_space<vmem>>, vector<64x32xbf16>
    %cst_21 = arith.constant dense<0.000000e+00> : vector<8x32xf32>
    %32 = tpu.matmul %30, %31, %cst_21 {dimension_numbers = #tpu.dot_dimension_numbers<[1], [0], [0], [1], [0, 0, 1, 1], [], []>} : vector<8x64xbf16>, vector<64x32xbf16>, vector<8x32xf32> -> vector<8x32xf32>
    %c0_22 = arith.constant 0 : index
    %c0_23 = arith.constant 0 : index
    %33 = vector.load %arg9[%c0_22, %c0_23] : memref<1x32xf32, #tpu.memory_space<vmem>>, vector<1x32xf32>
    %34 = vector.broadcast %33 : vector<1x32xf32> to vector<8x32xf32>
    %35 = arith.addf %32, %34 : vector<8x32xf32>
    %cst_24 = arith.constant 0.000000e+00 : f32
    %36 = vector.broadcast %cst_24 : f32 to vector<8x32xf32>
    %37 = arith.maximumf %35, %36 : vector<8x32xf32>
    %38 = arith.truncf %37 : vector<8x32xf32> to vector<8x32xbf16>
    %c0_25 = arith.constant 0 : index
    %c0_26 = arith.constant 0 : index
    %39 = vector.load %arg10[%c0_25, %c0_26] : memref<32x32xbf16, #tpu.memory_space<vmem>>, vector<32x32xbf16>
    %cst_27 = arith.constant dense<0.000000e+00> : vector<8x32xf32>
    %40 = tpu.matmul %38, %39, %cst_27 {dimension_numbers = #tpu.dot_dimension_numbers<[1], [0], [0], [1], [0, 0, 1, 1], [], []>} : vector<8x32xbf16>, vector<32x32xbf16>, vector<8x32xf32> -> vector<8x32xf32>
    %c0_28 = arith.constant 0 : index
    %c0_29 = arith.constant 0 : index
    %41 = vector.load %arg11[%c0_28, %c0_29] : memref<1x32xf32, #tpu.memory_space<vmem>>, vector<1x32xf32>
    %42 = vector.broadcast %41 : vector<1x32xf32> to vector<8x32xf32>
    %43 = arith.addf %40, %42 : vector<8x32xf32>
    %44 = arith.addf %43, %37 : vector<8x32xf32>
    %cst_30 = arith.constant 0.000000e+00 : f32
    %45 = vector.broadcast %cst_30 : f32 to vector<8x32xf32>
    %46 = arith.maximumf %44, %45 : vector<8x32xf32>
    %47 = arith.truncf %46 : vector<8x32xf32> to vector<8x32xbf16>
    %c0_31 = arith.constant 0 : index
    %c0_32 = arith.constant 0 : index
    %48 = vector.load %arg12[%c0_31, %c0_32] : memref<32x32xbf16, #tpu.memory_space<vmem>>, vector<32x32xbf16>
    %cst_33 = arith.constant dense<0.000000e+00> : vector<8x32xf32>
    %49 = tpu.matmul %47, %48, %cst_33 {dimension_numbers = #tpu.dot_dimension_numbers<[1], [0], [0], [1], [0, 0, 1, 1], [], []>} : vector<8x32xbf16>, vector<32x32xbf16>, vector<8x32xf32> -> vector<8x32xf32>
    %c0_34 = arith.constant 0 : index
    %c0_35 = arith.constant 0 : index
    %50 = vector.load %arg13[%c0_34, %c0_35] : memref<1x32xf32, #tpu.memory_space<vmem>>, vector<1x32xf32>
    %51 = vector.broadcast %50 : vector<1x32xf32> to vector<8x32xf32>
    %52 = arith.addf %49, %51 : vector<8x32xf32>
    %53 = arith.addf %52, %46 : vector<8x32xf32>
    %cst_36 = arith.constant 0.000000e+00 : f32
    %54 = vector.broadcast %cst_36 : f32 to vector<8x32xf32>
    %55 = arith.maximumf %53, %54 : vector<8x32xf32>
    %56 = arith.mulf %55, %55 : vector<8x32xf32>
    %cst_37 = arith.constant dense<0.000000e+00> : vector<8xf32>
    %57 = vector.multi_reduction <add>, %56, %cst_37 [1] : vector<8x32xf32> to vector<8xf32>
    %58 = vector.shape_cast %57 : vector<8xf32> to vector<8x1xf32>
    %cst_38 = arith.constant 1.000000e-24 : f32
    %59 = vector.broadcast %cst_38 : f32 to vector<8x1xf32>
    %60 = arith.maximumf %58, %59 : vector<8x1xf32>
    %61 = math.rsqrt %60 : vector<8x1xf32>
    %62 = vector.broadcast %61 : vector<8x1xf32> to vector<8x32xf32>
    %63 = arith.mulf %55, %62 : vector<8x32xf32>
    %64 = arith.truncf %63 : vector<8x32xf32> to vector<8x32xbf16>
    %c0_39 = arith.constant 0 : index
    %c0_40 = arith.constant 0 : index
    %65 = vector.load %arg14[%c0_39, %c0_40] : memref<32x4xbf16, #tpu.memory_space<vmem>>, vector<32x4xbf16>
    %cst_41 = arith.constant dense<0.000000e+00> : vector<8x4xf32>
    %66 = tpu.matmul %64, %65, %cst_41 {dimension_numbers = #tpu.dot_dimension_numbers<[1], [0], [0], [1], [0, 0, 1, 1], [], []>} : vector<8x32xbf16>, vector<32x4xbf16>, vector<8x4xf32> -> vector<8x4xf32>
    %c0_42 = arith.constant 0 : index
    %c0_43 = arith.constant 0 : index
    %67 = vector.load %arg15[%c0_42, %c0_43] : memref<1x4xf32, #tpu.memory_space<vmem>>, vector<1x4xf32>
    %68 = vector.broadcast %67 : vector<1x4xf32> to vector<8x4xf32>
    %69 = arith.addf %66, %68 : vector<8x4xf32>
    %c0_44 = arith.constant 0 : index
    %c0_45 = arith.constant 0 : index
    %70 = vector.load %arg16[%c0_44, %c0_45] : memref<8x4xf32, #tpu.memory_space<vmem>>, vector<8x4xf32>
    tpu.vector_store %arg16[%c0_44, %c0_45], %69 {strides = array<i32>} : memref<8x4xf32, #tpu.memory_space<vmem>>, vector<8x4xf32>,
    return
  }
  func.func @transform_0(%arg0: i32) -> (i32, i32) {
    %c0_i32 = arith.constant 0 : i32
    %c0_i32_0 = arith.constant 0 : i32
    return %arg0, %c0_i32 : i32, i32
  }
  func.func @transform_1(%arg0: i32) -> (i32, i32) {
    %c0_i32 = arith.constant 0 : i32
    %c0_i32_0 = arith.constant 0 : i32
    %c0_i32_1 = arith.constant 0 : i32
    return %c0_i32, %c0_i32_0 : i32, i32
  }
  func.func @transform_2(%arg0: i32) -> (i32, i32) {
    %c0_i32 = arith.constant 0 : i32
    %c0_i32_0 = arith.constant 0 : i32
    %c0_i32_1 = arith.constant 0 : i32
    return %c0_i32, %c0_i32_0 : i32, i32
  }
  func.func @transform_3(%arg0: i32) -> (i32, i32) {
    %c0_i32 = arith.constant 0 : i32
    %c0_i32_0 = arith.constant 0 : i32
    %c0_i32_1 = arith.constant 0 : i32
    return %c0_i32, %c0_i32_0 : i32, i32
  }
  func.func @transform_4(%arg0: i32) -> (i32, i32) {
    %c0_i32 = arith.constant 0 : i32
    %c0_i32_0 = arith.constant 0 : i32
    %c0_i32_1 = arith.constant 0 : i32
    return %c0_i32, %c0_i32_0 : i32, i32
  }
  func.func @transform_5(%arg0: i32) -> (i32, i32) {
    %c0_i32 = arith.constant 0 : i32
    %c0_i32_0 = arith.constant 0 : i32
    %c0_i32_1 = arith.constant 0 : i32
    return %c0_i32, %c0_i32_0 : i32, i32
  }
  func.func @transform_6(%arg0: i32) -> (i32, i32) {
    %c0_i32 = arith.constant 0 : i32
    %c0_i32_0 = arith.constant 0 : i32
    %c0_i32_1 = arith.constant 0 : i32
    return %c0_i32, %c0_i32_0 : i32, i32
  }
  func.func @transform_7(%arg0: i32) -> (i32, i32) {
    %c0_i32 = arith.constant 0 : i32
    %c0_i32_0 = arith.constant 0 : i32
    %c0_i32_1 = arith.constant 0 : i32
    return %c0_i32, %c0_i32_0 : i32, i32
  }
  func.func @transform_8(%arg0: i32) -> (i32, i32) {
    %c0_i32 = arith.constant 0 : i32
    %c0_i32_0 = arith.constant 0 : i32
    %c0_i32_1 = arith.constant 0 : i32
    return %c0_i32, %c0_i32_0 : i32, i32
  }
  func.func @transform_9(%arg0: i32) -> (i32, i32) {
    %c0_i32 = arith.constant 0 : i32
    %c0_i32_0 = arith.constant 0 : i32
    %c0_i32_1 = arith.constant 0 : i32
    return %c0_i32, %c0_i32_0 : i32, i32
  }
  func.func @transform_10(%arg0: i32) -> (i32, i32) {
    %c0_i32 = arith.constant 0 : i32
    %c0_i32_0 = arith.constant 0 : i32
    %c0_i32_1 = arith.constant 0 : i32
    return %c0_i32, %c0_i32_0 : i32, i32
  }
  func.func @transform_11(%arg0: i32) -> (i32, i32) {
    %c0_i32 = arith.constant 0 : i32
    %c0_i32_0 = arith.constant 0 : i32
    %c0_i32_1 = arith.constant 0 : i32
    return %c0_i32, %c0_i32_0 : i32, i32
  }
  func.func @transform_12(%arg0: i32) -> (i32, i32) {
    %c0_i32 = arith.constant 0 : i32
    %c0_i32_0 = arith.constant 0 : i32
    %c0_i32_1 = arith.constant 0 : i32
    return %c0_i32, %c0_i32_0 : i32, i32
  }
  func.func @transform_13(%arg0: i32) -> (i32, i32) {
    %c0_i32 = arith.constant 0 : i32
    %c0_i32_0 = arith.constant 0 : i32
    %c0_i32_1 = arith.constant 0 : i32
    return %c0_i32, %c0_i32_0 : i32, i32
  }
  func.func @transform_14(%arg0: i32) -> (i32, i32) {
    %c0_i32 = arith.constant 0 : i32
    %c0_i32_0 = arith.constant 0 : i32
    %c0_i32_1 = arith.constant 0 : i32
    return %c0_i32, %c0_i32_0 : i32, i32
  }
  func.func @transform_15(%arg0: i32) -> (i32, i32) {
    %c0_i32 = arith.constant 0 : i32
    %c0_i32_0 = arith.constant 0 : i32
    return %arg0, %c0_i32 : i32, i32
  }
}

</mosaic_0001>

<bundles_post_ra>
// kernel: deepcfr_mlp.1
= control target key start
LH: loop header
LB: loop body
LE: loop exit
PB: predicated region body
PF: predicated region fallthrough
CT: control target
= control target key end

     0   :  { %v820_v0 = vmov 0   ;;  %v821_v2 = vmov 0.0   ;;  %vm137_vm0 = vcmask 130048   ;;  %vm822_vm1 = vmmov 0   ;;  %s1048_s1 = inlined_call_operand.vmem [shape: bf16[144,64], index: 1, kind: input, shape index: {}]   ;;  %s1049_s0 = inlined_call_operand.vmem [shape: bf16[8,144], index: 0, kind: input, shape index: {}]   ;;  %s1050_s3 = inlined_call_operand.vmem [shape: bf16[64,64], index: 3, kind: input, shape index: {}]   ;;  %s1051_s5 = inlined_call_operand.vmem [shape: bf16[64,64], index: 5, kind: input, shape index: {}]   ;;  %s1052_s2 = inlined_call_operand.vmem [shape: f32[1,64], index: 2, kind: input, shape index: {}]   ;;  %s1053_s7 = inlined_call_operand.vmem [shape: bf16[64,32], index: 7, kind: input, shape index: {}]   ;;  %s1054_s4 = inlined_call_operand.vmem [shape: f32[1,64], index: 4, kind: input, shape index: {}]   ;;  %s1055_s9 = inlined_call_operand.vmem [shape: bf16[32,32], index: 9, kind: input, shape index: {}]   ;;  %s1056_s6 = inlined_call_operand.vmem [shape: f32[1,64], index: 6, kind: input, shape index: {}]   ;;  %s1057_s8 = inlined_call_operand.vmem [shape: f32[1,32], index: 8, kind: input, shape index: {}]   ;;  %s1058_s11 = inlined_call_operand.vmem [shape: bf16[32,32], index: 11, kind: input, shape index: {}]   ;;  %s1059_s10 = inlined_call_operand.vmem [shape: f32[1,32], index: 10, kind: input, shape index: {}]   ;;  %s1060_s12 = inlined_call_operand.vmem [shape: f32[1,32], index: 12, kind: input, shape index: {}]   ;;  %s1061_s13 = inlined_call_operand.vmem [shape: bf16[32,4], index: 13, kind: input, shape index: {}]   ;;  %s1062_s14 = inlined_call_operand.vmem [shape: f32[1,4], index: 14, kind: input, shape index: {}]   ;;  %s1063_s15 = inlined_call_operand.vmem [shape: f32[8,4], index: 15, kind: output, shape index: {}]  }
   0x1   :  { %141 = vmatprep.subr.bf16.mxu0 %v820_v0  ;;  %v789_v1 = vld [vmem:[%s1048_s1] sm:$0xff]   ;;  %726 = vmatprep.subr.bf16.mxu1 %v821_v2  ;;  %v790_v3 = vld [vmem:[%s1048_s1 + $0x8] sm:$0xff]   ;;  %v791_v4 = vld [vmem:[%s1048_s1 + $0x10] sm:$0xff]   ;;  %vm224_vm2 = vcmask 523264   ;;  %v182_v30 = vlaneseq  ;;  %vm464_vm4 = vcmask 261120   ;;  %vm653_vm5 = vcmask 31744  }
   0x2   :  { %142 = vmatpush1.bf16.msra.mxu0 %v789_v1  ;;  %v792_v5 = vld [vmem:[%s1048_s1 + $0x18] sm:$0xff]   ;;  %v51_v6 = vld [vmem:[%s1049_s0] sm:$0xff]  ;;  %v801_v9 = vld [vmem:[%s1050_s3 + $0x8] sm:$0xff]   ;;  %734 = vmatprep.mubr.msk.bf16.mxu1 %vm822_vm1, %v821_v2 }
   0x3   :  { %143 = vmatprep.subr.bf16.mxu0 %v820_v0  ;;  %v661_v7 = vcombine.high %v51_v6, %v51_v6  ;;  %v800_v8 = vld [vmem:[%s1050_s3] sm:$0xff]   ;;  %v794_v11 = vld [vmem:[%s1048_s1 + $0x28] sm:$0xff]   ;;  %v795_v12 = vld [vmem:[%s1048_s1 + $0x30] sm:$0xff]   ;;  %v660_v15 = vcombine.low %v51_v6, %v51_v6  ;;  %v183_v31 = vand.u32 127, %v182_v30 }
   0x4   :  { %727 = vmatpush3.bf16.msra.mxu1 %v800_v8  ;;  %v793_v10 = vld [vmem:[%s1048_s1 + $0x20] sm:$0xff]   ;;  %v796_v13 = vld [vmem:[%s1048_s1 + $0x38] sm:$0xff]   ;;  %v802_v16 = vld [vmem:[%s1050_s3 + $0x10] sm:$0xff]  }
   0x5   :  { %671 = vmatprep.mubr.msk.bf16.mxu0 %vm137_vm0, %v661_v7  ;;  %728 = vmatprep.subr.bf16.mxu1 %v821_v2  ;;  %v797_v14 = vld [vmem:[%s1048_s1 + $0x40] sm:$0xff]   ;;  %v803_v17 = vld [vmem:[%s1050_s3 + $0x18] sm:$0xff]   ;;  %v805_v27 = vld [vmem:[%s1051_s5 + $0x8] sm:$0xff]   ;;  %vm268_vm3 = vcmp.ge.s32.totalorder %v183_v31, 32 }
   0x6   :  { %144 = vmatpush1.bf16.msra.mxu0 %v790_v3  ;;  %v659_v18 = vld [vmem:[%s1052_s2] ss:$0 sm:$0xff]  ;;  %v806_v28 = vld [vmem:[%s1051_s5 + $0x10] sm:$0xff]   ;;  %v807_v29 = vld [vmem:[%s1051_s5 + $0x18] sm:$0xff]  }
   0x7   :  { %145 = vmatprep.subr.bf16.mxu0 %v820_v0  ;;  %v804_v25 = vld [vmem:[%s1051_s5] sm:$0xff]   ;;  %v809_v43 = vld [vmem:[%s1053_s7 + $0x8] sm:$0xff]   ;;  %v810_v44 = vld [vmem:[%s1053_s7 + $0x10] sm:$0xff]  }
   0x8   :  { %729 = vmatpush3.bf16.msra.mxu1 %v801_v9  ;;  %v672_v32 = vld [vmem:[%s1054_s4] ss:$0 sm:$0xff]  ;;  %v811_v45 = vld [vmem:[%s1053_s7 + $0x18] sm:$0xff]   ;;  %v813_v55 = vld [vmem:[%s1055_s9 + $0x8] sm:$0xff]  }
   0x9   :  { %730 = vmatprep.subr.bf16.mxu1 %v821_v2  ;;  %v808_v41 = vld [vmem:[%s1053_s7] sm:$0xff]   ;;  %v815_v1 = vld [vmem:[%s1058_s11 + $0x8] sm:$0xff]  }
   0xa   :  { %146 = vmatpush1.bf16.msra.mxu0 %v791_v4  ;;  %v812_v46 = vld [vmem:[%s1055_s9] sm:$0xff]  }
   0xb   :  { %147 = vmatprep.subr.bf16.mxu0 %v820_v0  ;;  %v678_v47 = vld [vmem:[%s1056_s6] ss:$0 sm:$0xff] }
   0xc   :  { %731 = vmatpush3.bf16.msra.mxu1 %v802_v16  ;;  %v684_v56 = vld [vmem:[%s1057_s8] ss:$0 sm:$0xff] }
   0xd   :  { %732 = vmatprep.subr.bf16.mxu1 %v821_v2  ;;  %v690_v3 = vld [vmem:[%s1059_s10] ss:$0 sm:$0xff] }
   0xe   :  { %148 = vmatpush1.bf16.msra.mxu0 %v792_v5 }
   0xf   :  { %149 = vmatprep.subr.bf16.mxu0 %v820_v0 }
  0x10   :  { %733 = vmatpush3.bf16.msra.mxu1 %v803_v17 }
  0x11   :  { %738 = vmatprep.subr.bf16.mxu1 %v821_v2 }
  0x12   :  { %150 = vmatpush1.bf16.msra.mxu0 %v793_v10 }
  0x13   :  { %151 = vmatprep.subr.bf16.mxu0 %v820_v0 }
  0x16   :  { %152 = vmatpush1.bf16.msra.mxu0 %v794_v11 }
  0x17   :  { %153 = vmatprep.subr.bf16.mxu0 %v820_v0 }
  0x1a   :  { %154 = vmatpush1.bf16.msra.mxu0 %v795_v12  ;;  %v694_v12 = vld [vmem:[%s1060_s12] ss:$0 sm:$0xff] }
  0x1b   :  { %155 = vmatprep.subr.bf16.mxu0 %v820_v0 }
  0x1e   :  { %156 = vmatpush1.bf16.msra.mxu0 %v796_v13 }
  0x1f   :  { %157 = vmatprep.subr.bf16.mxu0 %v820_v0  ;;  %v814_v0 = vld [vmem:[%s1058_s11] sm:$0xff]  }
  0x22   :  { %158 = vmatpush1.bf16.msra.mxu0 %v797_v14 }
  0x23   :  { %762 = vmatprep.subr.bf16.mxu0 %v821_v2 }
  0x25   :  { %174 = vmatmul.mubr.bf16.vlgmr.msra.gmra.mrb[0].mxu0 %v660_v15 }
  0x26   :  { %766 = vmatprep.mubr.msk.bf16.mxu0 %vm822_vm1, %v821_v2  ;;  %763 = vmatpush3.bf16.msra.mxu0 %v812_v46 }
  0x27   :  { %764 = vmatprep.subr.bf16.mxu0 %v821_v2 }
  0x2a   :  { %765 = vmatpush3.bf16.msra.mxu0 %v813_v55 }
  0x2b   :  { %770 = vmatprep.subr.bf16.mxu0 %v821_v2 }
  0xf8   :  { %v175_v19 = vpop.f32.mrb[0].mxu0 }
  0xf9   :  { %v176_v20 = vadd.f32 %v659_v18, %v175_v19  ;;  %v177_v21 = vpop.f32.mrb[1].mxu0 }
  0xfa   :  { %v178_v22 = vpop.f32.mrb[2].mxu0 }
  0xfb   :  { %v181_v23 = vmax.f32 %v176_v20, 0.0  ;;  %v179_v24 = vpop.f32.mrb[3].mxu0  ;;  %v816_v22 = vld [vmem:[%s1061_s13] sm:$0xff]  }
  0xfd   :  { %v184_v26 = vpack.c.bf16 %v181_v23, %v181_v23  ;;  %v269_v36 = vsel %vm268_vm3, %v181_v23, 0.0  ;;  %v817_v23 = vld [vmem:[%s1061_s13 + $0x8] sm:$0xff]  }
  0xff   :  { %735 = vmatmul.mubr.msk.bf16.vlgmr.msra.gmra.mrb[0].mxu1 %vm224_vm2, %v184_v26 }
 0x100   :  { %739 = vmatpush3.bf16.msra.mxu1 %v804_v25  ;;  %746 = vmatprep.mubr.msk.bf16.mxu1 %vm822_vm1, %v821_v2 }
 0x101   :  { %740 = vmatprep.subr.bf16.mxu1 %v821_v2 }
 0x104   :  { %741 = vmatpush3.bf16.msra.mxu1 %v805_v27 }
 0x105   :  { %742 = vmatprep.subr.bf16.mxu1 %v821_v2 }
 0x108   :  { %743 = vmatpush3.bf16.msra.mxu1 %v806_v28 }
 0x109   :  { %744 = vmatprep.subr.bf16.mxu1 %v821_v2 }
 0x10c   :  { %745 = vmatpush3.bf16.msra.mxu1 %v807_v29  ;;  %v698_v29 = vld [vmem:[%s1062_s14] ss:$0 sm:$0xff] }
 0x10d   :  { %750 = vmatprep.subr.bf16.mxu1 %v821_v2 }
 0x1d2   :  { %v262_v33 = vpop.f32.mrb[0].mxu1 }
 0x1d3   :  { %v263_v34 = vadd.f32 %v672_v32, %v262_v33  ;;  %v736_v35 = vpop.f32.mrb[1].mxu1 }
 0x1d4   :  { %v265_v37 = vpop.f32.mrb[2].mxu1 }
 0x1d5   :  { %v270_v38 = vadd.f32 %v269_v36, %v263_v34  ;;  %v737_v39 = vpop.f32.mrb[3].mxu1 }
 0x1d7   :  { %v271_v40 = vmax.f32 %v270_v38, 0.0 }
 0x1d9   :  { %v272_v42 = vpack.c.bf16 %v271_v40, %v271_v40 }
 0x1db   :  { %747 = vmatmul.mubr.msk.bf16.vlgmr.msra.gmra.mrb[4].mxu1 %vm224_vm2, %v272_v42 }
 0x1dc   :  { %751 = vmatpush3.bf16.msra.mxu1 %v808_v41  ;;  %758 = vmatprep.mubr.msk.bf16.mxu1 %vm822_vm1, %v821_v2 }
 0x1dd   :  { %752 = vmatprep.subr.bf16.mxu1 %v821_v2 }
 0x1e0   :  { %753 = vmatpush3.bf16.msra.mxu1 %v809_v43 }
 0x1e1   :  { %754 = vmatprep.subr.bf16.mxu1 %v821_v2 }
 0x1e4   :  { %755 = vmatpush3.bf16.msra.mxu1 %v810_v44 }
 0x1e5   :  { %756 = vmatprep.subr.bf16.mxu1 %v821_v2 }
 0x1e8   :  { %757 = vmatpush3.bf16.msra.mxu1 %v811_v45 }
 0x1e9   :  { %778 = vmatprep.subr.bf16.mxu1 %v821_v2 }
 0x2ae   :  { %v349_v48 = vpop.f32.mrb[4].mxu1 }
 0x2af   :  { %v350_v49 = vadd.f32 %v678_v47, %v349_v48  ;;  %v748_v50 = vpop.f32.mrb[5].mxu1 }
 0x2b0   :  { %v352_v51 = vpop.f32.mrb[6].mxu1 }
 0x2b1   :  { %v355_v52 = vmax.f32 %v350_v49, 0.0  ;;  %v749_v53 = vpop.f32.mrb[7].mxu1 }
 0x2b3   :  { %v356_v54 = vpack.c.bf16 %v355_v52, %v355_v52 }
 0x2b5   :  { %759 = vmatmul.mubr.msk.bf16.vlgmr.msra.gmra.mrb[8].mxu1 %vm224_vm2, %v356_v54 }
 0x2b6   :  { %782 = vmatprep.mubr.msk.bf16.mxu1 %vm822_vm1, %v821_v2  ;;  %779 = vmatpush3.bf16.msra.mxu1 %v816_v22 }
 0x2b7   :  { %780 = vmatprep.subr.bf16.mxu1 %v821_v2 }
 0x2ba   :  { %781 = vmatpush3.bf16.msra.mxu1 %v817_v23 }
 0x388   :  { %v433_v57 = vpop.f32.mrb[8].mxu1 }
 0x389   :  { %v434_v58 = vadd.f32 %v684_v56, %v433_v57  ;;  %v760_v59 = vpop.f32.mrb[9].mxu1 }
 0x38a   :  { %v436_v60 = vpop.f32.mrb[10].mxu1 }
 0x38b   :  { %v439_v61 = vmax.f32 %v434_v58, 0.0  ;;  %v761_v62 = vpop.f32.mrb[11].mxu1 }
 0x38d   :  { %v440_v63 = vpack.c.bf16 %v439_v61, %v439_v61 }
 0x38f   :  { %767 = vmatmul.mubr.msk.bf16.vlgmr.msra.gmra.mrb[4].mxu0 %vm464_vm4, %v440_v63 }
 0x390   :  { %774 = vmatprep.mubr.msk.bf16.mxu0 %vm822_vm1, %v821_v2  ;;  %771 = vmatpush3.bf16.msra.mxu0 %v814_v0 }
 0x391   :  { %772 = vmatprep.subr.bf16.mxu0 %v821_v2 }
 0x394   :  { %773 = vmatpush3.bf16.msra.mxu0 %v815_v1 }
 0x462   :  { %v502_v4 = vpop.f32.mrb[4].mxu0 }
 0x463   :  { %v503_v5 = vadd.f32 %v690_v3, %v502_v4  ;;  %v768_v6 = vpop.f32.mrb[5].mxu0 }
 0x464   :  { %v505_v7 = vpop.f32.mrb[6].mxu0 }
 0x465   :  { %v508_v8 = vadd.f32 %v503_v5, %v439_v61  ;;  %v769_v9 = vpop.f32.mrb[7].mxu0 }
 0x467   :  { %v509_v10 = vmax.f32 %v508_v8, 0.0 }
 0x469   :  { %v510_v11 = vpack.c.bf16 %v509_v10, %v509_v10 }
 0x46b   :  { %775 = vmatmul.mubr.msk.bf16.vlgmr.msra.gmra.mrb[8].mxu0 %vm464_vm4, %v510_v11 }
 0x53e   :  { %v571_v13 = vpop.f32.mrb[8].mxu0 }
 0x53f   :  { %v572_v14 = vadd.f32 %v694_v12, %v571_v13  ;;  %v776_v15 = vpop.f32.mrb[9].mxu0 }
 0x540   :  { %v574_v16 = vpop.f32.mrb[10].mxu0 }
 0x541   :  { %v577_v17 = vadd.f32 %v572_v14, %v509_v10  ;;  %v777_v18 = vpop.f32.mrb[11].mxu0 }
 0x543   :  { %v578_v19 = vmax.f32 %v577_v17, 0.0 }
 0x545   :  { %v579_v20 = vmul.f32 %v578_v19, %v578_v19 }
 0x547   :  { %v580_v21 = vsel %vm464_vm4, %v579_v20, 0.0 }
 0x548   :  { %581 = vadd.xlane.f32.xlu0 %v580_v21 }
 0x5d5   :  { %v582_v24 = vpop.xlane.xlu0 %581 }
 0x5d6   :  { %v583_v25 = vmax.f32 %v582_v24, 1e-24 }
 0x5d8   :  { %818 = vrsqrt.f32 %v583_v25 }
 0x5e2   :  { %v819_v26 = vpop.eup %818 }
 0x5e3   :  { %v585_v27 = vmul.f32 %v819_v26, %v578_v19 }
 0x5e5   :  { %v586_v28 = vpack.c.bf16 %v585_v27, %v585_v27 }
 0x5e7   :  { %783 = vmatmul.mubr.msk.bf16.vlgmr.msra.gmra.mrb[12].mxu1 %vm464_vm4, %v586_v28 }
 0x6ba   :  { %v647_v30 = vpop.f32.mrb[12].mxu1 }
 0x6bb   :  { %v648_v2 = vadd.f32 %v698_v29, %v647_v30  ;;  %v784_v31 = vpop.f32.mrb[13].mxu1 }
 0x6bc   :  { %v650_v32 = vpop.f32.mrb[14].mxu1 }
 0x6bd   :  { %654 = vst.msk [vmem:[%s1063_s15] sm:$0xff] %vm653_vm5, %v648_v2  ;;  %v785_v33 = vpop.f32.mrb[15].mxu1 }

</bundles_post_ra>
